<compile_context>
chip_gen: v6e
topology: v6e:2x2x1
jax: 0.10.0
libtpu: 0.0.40
codegen_flags: <defaults>
</compile_context>

<pallas_src>
import math

import jax
import jax.numpy as jnp
from jax.experimental import pallas as pl
from jax.experimental.pallas import tpu as pltpu


def build_pe_table(d_model: int, max_len: int = 5000) -> jnp.ndarray:
    """Deterministic sinusoidal table, shape (max_len, d_model), float32."""
    position = jnp.arange(0, max_len, dtype=jnp.float32)[:, None]            # (L, 1)
    div_term = jnp.exp(
        jnp.arange(0, d_model, 2, dtype=jnp.float32) * (-math.log(10000.0) / d_model)
    )                                                                         # (ceil(D/2),)
    angles = position * div_term                                              # (L, ceil(D/2))
    pe = jnp.zeros((max_len, d_model), dtype=jnp.float32)
    pe = pe.at[:, 0::2].set(jnp.sin(angles))
    pe = pe.at[:, 1::2].set(jnp.cos(angles[:, : d_model // 2]))               # odd-D safe
    return pe


def _pos_enc_kernel_3d(x_ref, pe_ref, o_ref):
    # x_ref: (TS, B, D); pe_ref: (TS, D); o_ref: (TS, B, D).  Only used when
    # B % 8 == 0 and D % 128 == 0 (dense sublanes/lanes).
    x = x_ref[...].astype(jnp.float32)
    pe = pe_ref[...].astype(jnp.float32)
    o_ref[...] = (x + pe[:, None, :]).astype(o_ref.dtype)


def _pos_enc_kernel_flat(x_ref, pe_ref, o_ref):
    # x_ref/o_ref: (TS, B*D); pe_ref: (TS, D).  pe is replicated over B
    # in-VMEM (XLU/copy work hidden under HBM) instead of in the wrapper,
    # so no extra HBM traffic for the broadcast.
    reps = x_ref.shape[1] // pe_ref.shape[1]          # == B, static
    pe = pe_ref[...].astype(jnp.float32)
    if reps > 1:
        pe = jnp.tile(pe, (1, reps))
    o_ref[...] = (x_ref[...].astype(jnp.float32) + pe).astype(o_ref.dtype)


def _round_up(v: int, m: int) -> int:
    return ((v + m - 1) // m) * m


def _tpu_params():
    """Per-chip (vmem_limit_bytes, vmem_budget_bytes, min_blocks)."""
    vmem_cap = None
    try:
        info = pltpu.get_tpu_info()
        vmem_cap = getattr(info, "vmem_capacity_bytes", None)
    except Exception:
        vmem_cap = None
    if vmem_cap is None:
        vmem_cap = 128 << 20
    if vmem_cap <= (64 << 20):
        # v7x-class: 64 MiB VMEM per TC, 2 TCs/chip.  Keep the scoped limit
        # well under capacity and force >= 2 parallel grid blocks so both
        # TensorCores stream HBM.
        return 32 << 20, 12 << 20, 2
    # v5e / v6e: single TC, 128 MiB VMEM -> one big block if it fits (extra
    # grid steps are ~0.35 us pure overhead with no parallelism benefit).
    return 48 << 20, 24 << 20, 1


def positional_encoding(
    x: jnp.ndarray,
    pe_table: jnp.ndarray,
    *,
    vmem_budget_bytes: int | None = None,  # double-buffered working-set budget
    donate_x: bool = False,                # alias x -> out (in-place add)
) -> jnp.ndarray:
    """x: (S, B, D); pe_table: (max_len, D) f32 -> (S, B, D) in x.dtype."""
    S, B, D = x.shape
    max_len, d_model = pe_table.shape
    assert d_model == D, "pe_table d_model mismatch"
    assert S <= max_len, "sequence longer than positional-encoding table"

    vmem_limit_bytes, default_budget, min_blocks = _tpu_params()
    if vmem_budget_bytes is None:
        vmem_budget_bytes = default_budget

    # pe stream dtype: match a bf16 x (halves pe HBM bytes / vreg footprint);
    # the add itself still accumulates in f32 in-registers.
    pe_dtype = jnp.bfloat16 if x.dtype == jnp.bfloat16 else pe_table.dtype
    itemsize = jnp.dtype(x.dtype).itemsize
    pe_itemsize = jnp.dtype(pe_dtype).itemsize

    # 3-D (TS, B, D) blocks only when both minor dims are vreg-dense:
    # B -> sublanes (x8), D -> lanes (x128).  Otherwise flatten to (S, B*D).
    use_3d = (B % 8 == 0) and (D % 128 == 0)

    # Per-S-row VMEM bytes of one block set (x in + out + pe in), using the
    # *padded* sublane/lane footprint so the budget math matches reality.
    if use_3d:
        row_bytes = 2 * B * D * itemsize + D * pe_itemsize
    else:
        row_bytes = (2 * _round_up(B * D, 128) * itemsize
                     + _round_up(D, 128) * pe_itemsize)

    ts = vmem_budget_bytes // (2 * row_bytes)          # 2x: double-buffered pipeline
    ts = max(8, (ts // 8) * 8)                         # sublane-aligned row blocks
    if min_blocks > 1 and S > 8:
        # v7x: cap TS so the "parallel" grid has >= min_blocks blocks and the
        # work splits evenly across the two TensorCores.
        ts = min(ts, max(8, _round_up(pl.cdiv(S, min_blocks), 8)))
    # TODO(synk): also tile over B*D if a single 8-row block ever exceeds the
    # VMEM budget (not reachable for this module's realistic (S, B, d_model)).

    if ts >= S:
        TS, n_blocks = S, 1
    else:
        TS, n_blocks = ts, pl.cdiv(S, ts)

    # pe operand: always streamed as (TS, D) rows only — never tiled over B
    # in HBM.  Cast to bf16 (small one-off copy of S rows) only when needed.
    if pe_dtype != pe_table.dtype:
        pe_in = pe_table[:S].astype(pe_dtype)
    elif n_blocks == 1:
        pe_in = pe_table[:S]
    else:
        pe_in = pe_table                               # rows picked by index_map
    if n_blocks == 1:
        pe_spec = pl.BlockSpec((S, D), lambda i: (0, 0))
    else:
        pe_spec = pl.BlockSpec((TS, D), lambda i: (i, 0))

    if use_3d:
        x_in = x
        in_specs = [pl.BlockSpec((TS, B, D), lambda i: (i, 0, 0)), pe_spec]
        out_specs = pl.BlockSpec((TS, B, D), lambda i: (i, 0, 0))
        out_shape = jax.ShapeDtypeStruct((S, B, D), x.dtype)
        kernel = _pos_enc_kernel_3d
    else:
        # Sublane/lane-dense flat layout.  NOTE: with donate_x=True the alias
        # targets the reshape of x, so donation may silently not take effect
        # (extra copy) — documented, not fixed.
        x_in = x.reshape(S, B * D)
        in_specs = [pl.BlockSpec((TS, B * D), lambda i: (i, 0)), pe_spec]
        out_specs = pl.BlockSpec((TS, B * D), lambda i: (i, 0))
        out_shape = jax.ShapeDtypeStruct((S, B * D), x.dtype)
        kernel = _pos_enc_kernel_flat

    out = pl.pallas_call(
        kernel,
        out_shape=out_shape,
        grid_spec=pltpu.PrefetchScalarGridSpec(
            num_scalar_prefetch=0,
            grid=(n_blocks,),
            in_specs=in_specs,
            out_specs=out_specs,
        ),
        compiler_params=pltpu.CompilerParams(
            dimension_semantics=("parallel",),         # independent blocks -> v7x 2-TC shard
            vmem_limit_bytes=vmem_limit_bytes,
        ),
        input_output_aliases={0: 0} if donate_x else {},
    )(x_in, pe_in)

    if not use_3d:
        out = out.reshape(S, B, D)
    return out


if __name__ == "__main__":
    key = jax.random.PRNGKey(0)
    k1, k2, k3, k4 = jax.random.split(key, 4)

    def ref_fn(x, pe_table):
        return x.astype(jnp.float32) + pe_table[: x.shape[0]][:, None, :]

    # Case 1: module-sized small shape (B=2, d_model=32 -> flat path, single block).
    d1, L1, S1, B1 = 32, 64, 8, 2
    pe1 = build_pe_table(d1, L1)
    x1 = jax.random.normal(k1, (S1, B1, d1), dtype=jnp.float32)
    o1 = jax.block_until_ready(positional_encoding(x1, pe1))
    assert o1.shape == (S1, B1, d1)
    assert jnp.allclose(o1, ref_fn(x1, pe1), atol=1e-5, rtol=1e-5)

    # Case 2: vreg-dense 3-D path (B=8, D=128), tiny budget forces the
    # multi-block pipelined path (pe rows picked from the full table).
    d2, L2, S2, B2 = 128, 128, 64, 8
    pe2 = build_pe_table(d2, L2)
    x2 = jax.random.normal(k2, (S2, B2, d2), dtype=jnp.float32)
    o2 = jax.block_until_ready(positional_encoding(x2, pe2, vmem_budget_bytes=1 << 15))
    assert o2.shape == (S2, B2, d2)
    assert jnp.allclose(o2, ref_fn(x2, pe2), atol=1e-5, rtol=1e-5)

    # Case 3: small d_model / small B, multi-block flat path with in-kernel
    # pe replication over B.
    d3, L3, S3, B3 = 32, 128, 64, 4
    pe3 = build_pe_table(d3, L3)
    x3 = jax.random.normal(k3, (S3, B3, d3), dtype=jnp.float32)
    o3 = jax.block_until_ready(positional_encoding(x3, pe3, vmem_budget_bytes=1 << 14))
    assert o3.shape == (S3, B3, d3)
    assert jnp.allclose(o3, ref_fn(x3, pe3), atol=1e-5, rtol=1e-5)

    # Case 4: bf16 activations -> pe streamed in bf16, f32 in-register add.
    d4, L4, S4, B4 = 128, 64, 16, 2
    pe4 = build_pe_table(d4, L4)
    x4 = jax.random.normal(k4, (S4, B4, d4), dtype=jnp.float32).astype(jnp.bfloat16)
    o4 = jax.block_until_ready(positional_encoding(x4, pe4))
    assert o4.shape == (S4, B4, d4) and o4.dtype == jnp.bfloat16
    assert jnp.allclose(o4.astype(jnp.float32), ref_fn(x4, pe4), atol=6e-2, rtol=6e-2)

    print("KERNEL_OK")
</pallas_src>

<mosaic_0001>
module attributes {stable_mosaic.version = 11 : i64} {
  func.func @_pos_enc_kernel_flat(%arg0: i32, %arg1: memref<8x64xf32, #tpu.memory_space<vmem>>, %arg2: memref<8x32xf32, #tpu.memory_space<vmem>>, %arg3: memref<8x64xf32, #tpu.memory_space<vmem>>) attributes {dimension_semantics = [#tpu.dimension_semantics<parallel>], iteration_bounds = array<i64: 1>, scalar_prefetch = 0 : i64, scratch_operands = 0 : i64, tpu.core_type = #tpu.core_type<tc>, window_params = [{transform_indices = @transform_0, window_bounds = array<i64: 8, 64>}, {pipeline_mode = #tpu.pipeline_mode<synchronous>, transform_indices = @transform_1, window_bounds = array<i64: 8, 32>}, {transform_indices = @transform_2, window_bounds = array<i64: 8, 64>}]} {
    %c0 = arith.constant 0 : index
    %c0_0 = arith.constant 0 : index
    %0 = vector.load %arg2[%c0, %c0_0] : memref<8x32xf32, #tpu.memory_space<vmem>>, vector<8x32xf32>
    %1 = tpu.concatenate %0, %0 in 1 : vector<8x32xf32>, vector<8x32xf32> -> vector<8x64xf32>
    %c0_1 = arith.constant 0 : index
    %c0_2 = arith.constant 0 : index
    %2 = vector.load %arg1[%c0_1, %c0_2] : memref<8x64xf32, #tpu.memory_space<vmem>>, vector<8x64xf32>
    %3 = arith.addf %2, %1 : vector<8x64xf32>
    %c0_3 = arith.constant 0 : index
    %c0_4 = arith.constant 0 : index
    %4 = vector.load %arg3[%c0_3, %c0_4] : memref<8x64xf32, #tpu.memory_space<vmem>>, vector<8x64xf32>
    tpu.vector_store %arg3[%c0_3, %c0_4], %3 {strides = array<i32>} : memref<8x64xf32, #tpu.memory_space<vmem>>, vector<8x64xf32>,
    return
  }
  func.func @transform_0(%arg0: i32) -> (i32, i32) {
    %c0_i32 = arith.constant 0 : i32
    %c0_i32_0 = arith.constant 0 : i32
    return %arg0, %c0_i32 : i32, i32
  }
  func.func @transform_1(%arg0: i32) -> (i32, i32) {
    %c0_i32 = arith.constant 0 : i32
    %c0_i32_0 = arith.constant 0 : i32
    %c0_i32_1 = arith.constant 0 : i32
    return %c0_i32, %c0_i32_0 : i32, i32
  }
  func.func @transform_2(%arg0: i32) -> (i32, i32) {
    %c0_i32 = arith.constant 0 : i32
    %c0_i32_0 = arith.constant 0 : i32
    return %arg0, %c0_i32 : i32, i32
  }
}

</mosaic_0001>

<bundles_post_ra>
// kernel: tpu_custom_call.1
= control target key start
LH: loop header
LB: loop body
LE: loop exit
PB: predicated region body
PF: predicated region fallthrough
CT: control target
= control target key end

     0   :  { %7 = vsyncpa [#allocation3], 0  ;;  %s161_s0 = inlined_call_operand.hbm [shape: f32[8,64], index: 0, kind: input, shape index: {}]   ;;  %s162_s1 = inlined_call_operand.hbm [shape: f32[8,32], index: 1, kind: input, shape index: {}]   ;;  %s163_s2 = inlined_call_operand.hbm [shape: f32[8,64], index: 2, kind: output, shape index: {}]  }
   0x1   :  { %8 = vsyncpa [#allocation6], 0 }
   0x2   :  { %9 = vsyncpa [#allocation4], 0  ;;  %s133_s9 = smov [#allocation2]   ;;  %s134_s11 = smov [#allocation5]  }
   0x3   :  { %s16_s10 = sshll.u32 %s133_s9, 4  ;;  %s26_s12 = sshll.u32 %s134_s11, 4  ;;  %s17_s10 = int_to_ptr.vmem [resolvable:$true] %s16_s10  ;;  %s27_s12 = int_to_ptr.vmem [resolvable:$true] %s26_s12 }
   0x4   :  { %s75_s13 = scalar_lea.vmem %s17_s10, 128  ;;  %p80_p1 = scmp.lt.s32.totalorder %s17_s10, %s17_s10 }
   0x5   :  { %p76_p0 = scmp.ne.s32.totalorder %s17_s10, %s75_s13  ;;  %p81_p2 = scmp.lt.s32.totalorder %s75_s13, %s75_s13 }
   0x7   :  { %p82_p3 = por %p81_p2, %p80_p1 }
   0x9   :  { %p83_p4 = pnand %p82_p3, %p76_p0 }
   0xb   :  { %86 = shalt.err (!%p83_p4)
}
   0xc   :  { %19 = dma.hbm_to_vmem [thread:$0]  %s161_s0, 128, %s17_s10, [#allocation3]  }
   0xd   :  { %s95_s16 = scalar_lea.vmem %s27_s12, 128  ;;  %p100_p6 = scmp.lt.s32.totalorder %s27_s12, %s27_s12 }
   0xe   :  { %p96_p5 = scmp.ne.s32.totalorder %s27_s12, %s95_s16  ;;  %p101_p7 = scmp.lt.s32.totalorder %s95_s16, %s95_s16 }
  0x10   :  { %p102_p8 = por %p101_p7, %p100_p6 }
  0x12   :  { %p103_p9 = pnand %p102_p8, %p96_p5 }
  0x14   :  { %106 = shalt.err (!%p103_p9)
}
  0x15   :  { %29 = dma.hbm_to_vmem [thread:$0]  %s162_s1, 128, %s27_s12, [#allocation6]  }
  0x16   :  { %127 = dma.done.wait [#allocation3], 128  }
  0x17   :  { %128 = vsyncadd [#allocation3], 4294967168 }
  0x18   :  { %129 = dma.done.wait [#allocation6], 128  }
  0x19   :  { %130 = vsyncadd [#allocation6], 4294967168  ;;  %v36_v0 = vld [vmem:[#allocation5] sm:$0xff]  ;;  %s135_s19 = smov 32   ;;  %vm41_vm0 = vcmask 261120   ;;  %v43_v1 = vld [vmem:[#allocation2] sm:$0xff] }
  0x1a   :  { %38 = vrot.lane.b32.xlu0 %v36_v0, %s135_s19  ;;  %s136_s0 = smov [#allocation7]   ;;  %vm45_vm1 = vcmask 523264  }
  0x1b   :  { %s53_s20 = sshll.u32 %s136_s0, 4  ;;  %s54_s20 = int_to_ptr.vmem [resolvable:$true] %s53_s20 }
  0x1c   :  { %s107_s21 = scalar_lea.vmem %s54_s20, 128  ;;  %p112_p11 = scmp.lt.s32.totalorder %s54_s20, %s54_s20 }
  0x1d   :  { %p108_p10 = scmp.ne.s32.totalorder %s54_s20, %s107_s21  ;;  %p113_p12 = scmp.lt.s32.totalorder %s107_s21, %s107_s21 }
  0x1f   :  { %p114_p13 = por %p113_p12, %p112_p11 }
  0x21   :  { %p115_p0 = pnand %p114_p13, %p108_p10 }
  0x8c   :  { %v39_v2 = vpop.permute.xlu0 %38 }
  0x8d   :  { %v42_v3 = vsel %vm41_vm0, %v36_v0, %v39_v2 }
  0x8e   :  { %v44_v4 = vadd.f32 %v43_v1, %v42_v3 }
  0x90   :  { %46 = vst.msk [vmem:[#allocation7] sm:$0xff] %vm45_vm1, %v44_v4 }
  0x91   :  { %118 = shalt.err (!%p115_p0)
}
  0x92   :  { %56 = dma.vmem_to_hbm [thread:$0]  %s54_s20, 128, %s163_s2, [#allocation4]  }
  0x93   :  { %131 = dma.done.wait [#allocation4], 128  }
  0x94   :  { %132 = vsyncadd [#allocation4], 4294967168 }
  0x95   :  { %60 = vsyncpa [#allocation3], 1 }
  0x96   :  { %61 = vsyncpa [#allocation6], 1 }
  0x97   :  { %62 = vsyncpa [#allocation4], 1 }

</bundles_post_ra>
